<compile_context>
chip_gen: v6e
topology: v6e:2x2x1
jax: 0.10.0
libtpu: 0.0.40
codegen_flags: <defaults>
</compile_context>

<pallas_src>
import functools

import jax
import jax.numpy as jnp
from jax import lax
from jax.experimental import pallas as pl
from jax.experimental.pallas import tpu as pltpu


def make_lstm_classifier_kernel(T, B, H):
    def kernel(ids_f_ref,   # [T*B, 1] int32  token id at time t      (row = t*B + b)
               ids_b_ref,   # [T*B, 1] int32  token id at time T-1-t
               emb_ref,     # [Vp, E]  embedding table (vocab padded to mult. of 8)
               w_in_f_ref,  # [E, 8H]  fwd input weights -> fwd gate columns (g cols x2)
               w_in_b_ref,  # [E, 8H]  bwd input weights -> bwd gate columns (g cols x2)
               b_in_ref,    # [1, 8H]  fused bias (b_ih + b_hh, g cols x2)
               whh_ref,     # [2H, 8H] block-structured recurrent weights (g cols x2)
               fcw_ref,     # [2H, Opad] fc weight, zero-padded to 128 lanes
               fcb_ref,     # [1, Opad]  fc bias, zero-padded
               out_ref,     # [B, Opad]  padded logits
               gx_ref):     # [T*B, 8H] VMEM scratch: fused gate inputs, all steps
        Vp = emb_ref.shape[0]

        # ---- embedding gather as a one-hot MXU matmul (off the recurrent chain)
        vocab_iota = lax.broadcasted_iota(jnp.int32, (T * B, Vp), 1)
        oh_f = (ids_f_ref[...] == vocab_iota).astype(jnp.float32)     # [T*B, Vp]
        oh_b = (ids_b_ref[...] == vocab_iota).astype(jnp.float32)
        emb = emb_ref[...]
        x_f = jnp.dot(oh_f, emb, preferred_element_type=jnp.float32)  # [T*B, E]
        x_b = jnp.dot(oh_b, emb, preferred_element_type=jnp.float32)  # [T*B, E]

        # ---- input projection for every timestep and both directions ---------
        # fwd-time rows feed only the fwd gate columns, reversed-time rows feed
        # only the bwd gate columns (block-structured weights), so no per-step
        # fwd/bwd select is needed later.  Stays in VMEM scratch, not vregs.
        gx_ref[...] = (
            jnp.dot(x_f, w_in_f_ref[...], preferred_element_type=jnp.float32)
            + jnp.dot(x_b, w_in_b_ref[...], preferred_element_type=jnp.float32)
            + b_in_ref[...])                                           # [T*B, 8H]

        whh = whh_ref[...]                                             # [2H, 8H]

        # ---- fused bidirectional recurrence, fully unrolled -------------------
        h = jnp.zeros((B, 2 * H), jnp.float32)                         # [h_fwd | h_bwd]
        c = jnp.zeros((B, 2 * H), jnp.float32)

        for t in range(T):                                             # T is static
            gx_t = gx_ref[t * B:(t + 1) * B, :]                        # [B, 8H]
            gates = (jnp.dot(h, whh, preferred_element_type=jnp.float32)
                     + gx_t)                                           # [B, 8H]
            # single EUP pass: sigmoid on all 8H lanes; the g block's
            # pre-activation was doubled host-side, so tanh(z) == 2*s - 1.
            s = jax.nn.sigmoid(gates)
            i_t = s[:, 0 * H:2 * H]                                    # [i_f | i_b]
            f_t = s[:, 2 * H:4 * H]                                    # [f_f | f_b]
            g_t = 2.0 * s[:, 4 * H:6 * H] - 1.0                        # [g_f | g_b] (tanh)
            o_t = s[:, 6 * H:8 * H]                                    # [o_f | o_b]
            c = f_t * c + i_t * g_t
            h = o_t * jnp.tanh(c)

        # h == [h_fwd_final | h_bwd_final] == torch.cat((hidden[-2], hidden[-1]), 1)
        out_ref[...] = (jnp.dot(h, fcw_ref[...],
                                preferred_element_type=jnp.float32)
                        + fcb_ref[...])

    return kernel


def pack_params(p):
    """One-time (outside jit) packing of per-direction PyTorch-style weights."""
    H = p["whh_f"].shape[0]
    O = p["fc_b"].shape[-1]
    V, E = p["embedding"].shape

    def group(wf, wb):  # per-gate column grouping: [i_f i_b | f_f f_b | g_f g_b | o_f o_b]
        blocks = []
        for k in range(4):
            blocks.append(wf[..., k * H:(k + 1) * H])
            blocks.append(wb[..., k * H:(k + 1) * H])
        return jnp.concatenate(blocks, axis=-1)

    def scale_g(w):  # pre-scale tanh-gate columns by 2 (tanh(z) = 2*sigmoid(2z) - 1)
        return w.at[..., 4 * H:6 * H].multiply(2.0)

    z = jnp.zeros_like(p["wih_f"])
    w_in_f = scale_g(group(p["wih_f"], z))            # [E, 8H]: bwd columns zero
    w_in_b = scale_g(group(z, p["wih_b"]))            # [E, 8H]: fwd columns zero
    # NOTE: when importing real PyTorch weights, b = b_ih + b_hh per direction.
    b_in = scale_g(group(p["b_f"], p["b_b"]))         # [1, 8H]

    whh = jnp.zeros((2 * H, 8 * H), jnp.float32)      # block-diag per gate
    for k in range(4):
        whh = whh.at[0:H, 2 * k * H:2 * k * H + H].set(
            p["whh_f"][:, k * H:(k + 1) * H])
        whh = whh.at[H:2 * H, 2 * k * H + H:2 * (k + 1) * H].set(
            p["whh_b"][:, k * H:(k + 1) * H])
    whh = scale_g(whh)

    V_pad = ((V + 7) // 8) * 8
    emb = jnp.zeros((V_pad, E), jnp.float32).at[:V, :].set(p["embedding"])

    O_PAD = 128                                       # lane-dense fc output
    fc_w = jnp.zeros((2 * H, O_PAD), jnp.float32).at[:, :O].set(p["fc_w"])
    fc_b = jnp.zeros((1, O_PAD), jnp.float32).at[:, :O].set(p["fc_b"])

    return {"emb": emb, "w_in_f": w_in_f, "w_in_b": w_in_b, "b_in": b_in,
            "whh": whh, "fc_w": fc_w, "fc_b": fc_b}


@functools.partial(jax.jit, static_argnames=("out_dim",))
def lstm_classifier_forward(token_ids, packed, *, out_dim):
    B, T = token_ids.shape
    H = packed["whh"].shape[0] // 2
    O_pad = packed["fc_w"].shape[-1]

    # tiny int32 index plumbing (64 B); everything heavy happens in the kernel
    ids_tm = token_ids.astype(jnp.int32).T            # [T, B] time-major
    ids_f = ids_tm.reshape(T * B, 1)                  # id of x_t        for row t*B+b
    ids_b = ids_tm[::-1].reshape(T * B, 1)            # id of x_{T-1-t}  for row t*B+b

    vmem = pl.BlockSpec(memory_space=pltpu.MemorySpace.VMEM)
    kernel = make_lstm_classifier_kernel(T, B, H)
    out_pad = pl.pallas_call(
        kernel,
        out_shape=jax.ShapeDtypeStruct((B, O_pad), jnp.float32),
        in_specs=[vmem] * 9,
        out_specs=vmem,
        scratch_shapes=[pltpu.VMEM((T * B, 8 * H), jnp.float32)],
    )(ids_f, ids_b, packed["emb"], packed["w_in_f"], packed["w_in_b"],
      packed["b_in"], packed["whh"], packed["fc_w"], packed["fc_b"])
    return out_pad[:, :out_dim]


def reference_forward(token_ids, p):
    # Pure-JAX reference (matches PyTorch LSTM semantics, dropout=0 / eval).
    emb = p["embedding"][token_ids].astype(jnp.float32)          # [B, T, E]
    B = emb.shape[0]
    H = p["whh_f"].shape[0]

    def run(x_seq_tm, wih, whh, b):        # x_seq_tm: [T, B, E]
        def step(carry, x_t):
            h, c = carry
            gates = x_t @ wih + h @ whh + b
            i = jax.nn.sigmoid(gates[:, :H])
            f = jax.nn.sigmoid(gates[:, H:2 * H])
            g = jnp.tanh(gates[:, 2 * H:3 * H])
            o = jax.nn.sigmoid(gates[:, 3 * H:])
            c = f * c + i * g
            h = o * jnp.tanh(c)
            return (h, c), None

        (h, _), _ = lax.scan(step,
                             (jnp.zeros((B, H)), jnp.zeros((B, H))),
                             x_seq_tm)
        return h

    x_tm = jnp.transpose(emb, (1, 0, 2))
    h_fwd = run(x_tm, p["wih_f"], p["whh_f"], p["b_f"])
    h_bwd = run(x_tm[::-1], p["wih_b"], p["whh_b"], p["b_b"])
    h_cat = jnp.concatenate([h_fwd, h_bwd], axis=1)
    return h_cat @ p["fc_w"] + p["fc_b"]


def init_params(key, vocab_size, embedding_dim, hidden_dim, output_dim, pad_idx):
    ks = jax.random.split(key, 9)
    s = 1.0 / jnp.sqrt(hidden_dim)

    def u(k, shape):
        return jax.random.uniform(k, shape, jnp.float32, minval=-s, maxval=s)

    emb = jax.random.normal(ks[0], (vocab_size, embedding_dim), jnp.float32) * 0.1
    emb = emb.at[pad_idx].set(0.0)                 # padding_idx row is zeros

    return {
        "embedding": emb,
        "wih_f": u(ks[1], (embedding_dim, 4 * hidden_dim)),
        "whh_f": u(ks[2], (hidden_dim, 4 * hidden_dim)),
        "b_f":   u(ks[3], (1, 4 * hidden_dim)),
        "wih_b": u(ks[4], (embedding_dim, 4 * hidden_dim)),
        "whh_b": u(ks[5], (hidden_dim, 4 * hidden_dim)),
        "b_b":   u(ks[6], (1, 4 * hidden_dim)),
        "fc_w":  u(ks[7], (2 * hidden_dim, output_dim)),
        "fc_b":  u(ks[8], (1, output_dim)),
    }


if __name__ == "__main__":
    # Module hyper-params: vocab=50, emb=16, hidden=32, out=4,
    # n_layers=1, bidirectional=True, dropout=0.0, pad_idx=0
    VOCAB, E, H, O, PAD = 50, 16, 32, 4, 0
    B, T = 2, 8

    key = jax.random.PRNGKey(0)
    k_params, k_tokens = jax.random.split(key)
    params = init_params(k_params, VOCAB, E, H, O, PAD)
    packed = pack_params(params)                       # packed ONCE, outside jit
    text = jax.random.randint(k_tokens, (B, T), 0, VOCAB, dtype=jnp.int32)

    logits = jax.block_until_ready(lstm_classifier_forward(text, packed, out_dim=O))
    ref = jax.block_until_ready(reference_forward(text, params))

    assert logits.shape == (B, O), logits.shape
    assert jnp.allclose(logits, ref, atol=1e-4, rtol=1e-4), (logits, ref)
    print("KERNEL_OK")
</pallas_src>

<mosaic_0001>
module attributes {stable_mosaic.version = 11 : i64} {
  func.func @kernel(%arg0: memref<16x1xi32, #tpu.memory_space<vmem>>, %arg1: memref<16x1xi32, #tpu.memory_space<vmem>>, %arg2: memref<56x16xf32, #tpu.memory_space<vmem>>, %arg3: memref<16x256xf32, #tpu.memory_space<vmem>>, %arg4: memref<16x256xf32, #tpu.memory_space<vmem>>, %arg5: memref<1x256xf32, #tpu.memory_space<vmem>>, %arg6: memref<64x256xf32, #tpu.memory_space<vmem>>, %arg7: memref<64x128xf32, #tpu.memory_space<vmem>>, %arg8: memref<1x128xf32, #tpu.memory_space<vmem>>, %arg9: memref<2x128xf32, #tpu.memory_space<vmem>>, %arg10: memref<16x256xf32, #tpu.memory_space<vmem>>) attributes {dimension_semantics = [], scalar_prefetch = 0 : i64, scratch_operands = 1 : i64, tpu.core_type = #tpu.core_type<tc>} {
    %0 = tpu.iota {dimensions = array<i32: 1>} : vector<16x56xi32>
    %c0 = arith.constant 0 : index
    %c0_0 = arith.constant 0 : index
    %1 = vector.load %arg0[%c0, %c0_0] : memref<16x1xi32, #tpu.memory_space<vmem>>, vector<16x1xi32>
    %2 = vector.broadcast %1 : vector<16x1xi32> to vector<16x56xi32>
    %3 = arith.cmpi eq, %2, %0 : vector<16x56xi32>
    %4 = arith.extui %3 : vector<16x56xi1> to vector<16x56xi32>
    %5 = arith.sitofp %4 : vector<16x56xi32> to vector<16x56xf32>
    %c0_1 = arith.constant 0 : index
    %c0_2 = arith.constant 0 : index
    %6 = vector.load %arg1[%c0_1, %c0_2] : memref<16x1xi32, #tpu.memory_space<vmem>>, vector<16x1xi32>
    %7 = vector.broadcast %6 : vector<16x1xi32> to vector<16x56xi32>
    %8 = arith.cmpi eq, %7, %0 : vector<16x56xi32>
    %9 = arith.extui %8 : vector<16x56xi1> to vector<16x56xi32>
    %10 = arith.sitofp %9 : vector<16x56xi32> to vector<16x56xf32>
    %c0_3 = arith.constant 0 : index
    %c0_4 = arith.constant 0 : index
    %11 = vector.load %arg2[%c0_3, %c0_4] : memref<56x16xf32, #tpu.memory_space<vmem>>, vector<56x16xf32>
    %cst = arith.constant dense<0.000000e+00> : vector<16x16xf32>
    %12 = tpu.matmul %5, %11, %cst {dimension_numbers = #tpu.dot_dimension_numbers<[1], [0], [0], [1], [0, 0, 1, 1], [], []>} : vector<16x56xf32>, vector<56x16xf32>, vector<16x16xf32> -> vector<16x16xf32>
    %cst_5 = arith.constant dense<0.000000e+00> : vector<16x16xf32>
    %13 = tpu.matmul %10, %11, %cst_5 {dimension_numbers = #tpu.dot_dimension_numbers<[1], [0], [0], [1], [0, 0, 1, 1], [], []>} : vector<16x56xf32>, vector<56x16xf32>, vector<16x16xf32> -> vector<16x16xf32>
    %c0_6 = arith.constant 0 : index
    %c0_7 = arith.constant 0 : index
    %14 = vector.load %arg3[%c0_6, %c0_7] : memref<16x256xf32, #tpu.memory_space<vmem>>, vector<16x256xf32>
    %cst_8 = arith.constant dense<0.000000e+00> : vector<16x256xf32>
    %15 = tpu.matmul %12, %14, %cst_8 {dimension_numbers = #tpu.dot_dimension_numbers<[1], [0], [0], [1], [0, 0, 1, 1], [], []>} : vector<16x16xf32>, vector<16x256xf32>, vector<16x256xf32> -> vector<16x256xf32>
    %c0_9 = arith.constant 0 : index
    %c0_10 = arith.constant 0 : index
    %16 = vector.load %arg4[%c0_9, %c0_10] : memref<16x256xf32, #tpu.memory_space<vmem>>, vector<16x256xf32>
    %cst_11 = arith.constant dense<0.000000e+00> : vector<16x256xf32>
    %17 = tpu.matmul %13, %16, %cst_11 {dimension_numbers = #tpu.dot_dimension_numbers<[1], [0], [0], [1], [0, 0, 1, 1], [], []>} : vector<16x16xf32>, vector<16x256xf32>, vector<16x256xf32> -> vector<16x256xf32>
    %18 = arith.addf %15, %17 : vector<16x256xf32>
    %c0_12 = arith.constant 0 : index
    %c0_13 = arith.constant 0 : index
    %19 = vector.load %arg5[%c0_12, %c0_13] : memref<1x256xf32, #tpu.memory_space<vmem>>, vector<1x256xf32>
    %20 = vector.broadcast %19 : vector<1x256xf32> to vector<16x256xf32>
    %21 = arith.addf %18, %20 : vector<16x256xf32>
    %c0_14 = arith.constant 0 : index
    %c0_15 = arith.constant 0 : index
    %22 = vector.load %arg10[%c0_14, %c0_15] : memref<16x256xf32, #tpu.memory_space<vmem>>, vector<16x256xf32>
    tpu.vector_store %arg10[%c0_14, %c0_15], %21 {strides = array<i32>} : memref<16x256xf32, #tpu.memory_space<vmem>>, vector<16x256xf32>,
    %c0_16 = arith.constant 0 : index
    %c0_17 = arith.constant 0 : index
    %23 = vector.load %arg6[%c0_16, %c0_17] : memref<64x256xf32, #tpu.memory_space<vmem>>, vector<64x256xf32>
    %cst_18 = arith.constant 0.000000e+00 : f32
    %24 = vector.broadcast %cst_18 : f32 to vector<2x64xf32>
    %cst_19 = arith.constant 0.000000e+00 : f32
    %25 = vector.broadcast %cst_19 : f32 to vector<2x64xf32>
    %c0_20 = arith.constant 0 : index
    %c0_21 = arith.constant 0 : index
    %26 = vector.load %arg10[%c0_20, %c0_21] : memref<16x256xf32, #tpu.memory_space<vmem>>, vector<2x256xf32>
    %cst_22 = arith.constant dense<0.000000e+00> : vector<2x256xf32>
    %27 = tpu.matmul %24, %23, %cst_22 {dimension_numbers = #tpu.dot_dimension_numbers<[1], [0], [0], [1], [0, 0, 1, 1], [], []>} : vector<2x64xf32>, vector<64x256xf32>, vector<2x256xf32> -> vector<2x256xf32>
    %28 = arith.addf %27, %26 : vector<2x256xf32>
    %29 = arith.negf %28 : vector<2x256xf32>
    %30 = math.exp %29 : vector<2x256xf32>
    %cst_23 = arith.constant 1.000000e+00 : f32
    %31 = vector.broadcast %cst_23 : f32 to vector<2x256xf32>
    %32 = arith.addf %31, %30 : vector<2x256xf32>
    %33 = arith.divf %31, %32 : vector<2x256xf32>
    %34 = vector.extract_strided_slice %33 {offsets = [0, 0], sizes = [2, 64], strides = [1, 1]} : vector<2x256xf32> to vector<2x64xf32>
    %35 = vector.extract_strided_slice %33 {offsets = [0, 64], sizes = [2, 64], strides = [1, 1]} : vector<2x256xf32> to vector<2x64xf32>
    %36 = vector.extract_strided_slice %33 {offsets = [0, 128], sizes = [2, 64], strides = [1, 1]} : vector<2x256xf32> to vector<2x64xf32>
    %cst_24 = arith.constant 2.000000e+00 : f32
    %37 = vector.broadcast %cst_24 : f32 to vector<2x64xf32>
    %38 = arith.mulf %37, %36 : vector<2x64xf32>
    %cst_25 = arith.constant 1.000000e+00 : f32
    %39 = vector.broadcast %cst_25 : f32 to vector<2x64xf32>
    %40 = arith.subf %38, %39 : vector<2x64xf32>
    %41 = vector.extract_strided_slice %33 {offsets = [0, 192], sizes = [2, 64], strides = [1, 1]} : vector<2x256xf32> to vector<2x64xf32>
    %42 = arith.mulf %35, %25 : vector<2x64xf32>
    %43 = arith.mulf %34, %40 : vector<2x64xf32>
    %44 = arith.addf %42, %43 : vector<2x64xf32>
    %45 = math.tanh %44 : vector<2x64xf32>
    %46 = arith.mulf %41, %45 : vector<2x64xf32>
    %c2 = arith.constant 2 : index
    %c0_26 = arith.constant 0 : index
    %47 = vector.load %arg10[%c2, %c0_26] : memref<16x256xf32, #tpu.memory_space<vmem>>, vector<2x256xf32>
    %cst_27 = arith.constant dense<0.000000e+00> : vector<2x256xf32>
    %48 = tpu.matmul %46, %23, %cst_27 {dimension_numbers = #tpu.dot_dimension_numbers<[1], [0], [0], [1], [0, 0, 1, 1], [], []>} : vector<2x64xf32>, vector<64x256xf32>, vector<2x256xf32> -> vector<2x256xf32>
    %49 = arith.addf %48, %47 : vector<2x256xf32>
    %50 = arith.negf %49 : vector<2x256xf32>
    %51 = math.exp %50 : vector<2x256xf32>
    %cst_28 = arith.constant 1.000000e+00 : f32
    %52 = vector.broadcast %cst_28 : f32 to vector<2x256xf32>
    %53 = arith.addf %52, %51 : vector<2x256xf32>
    %54 = arith.divf %52, %53 : vector<2x256xf32>
    %55 = vector.extract_strided_slice %54 {offsets = [0, 0], sizes = [2, 64], strides = [1, 1]} : vector<2x256xf32> to vector<2x64xf32>
    %56 = vector.extract_strided_slice %54 {offsets = [0, 64], sizes = [2, 64], strides = [1, 1]} : vector<2x256xf32> to vector<2x64xf32>
    %57 = vector.extract_strided_slice %54 {offsets = [0, 128], sizes = [2, 64], strides = [1, 1]} : vector<2x256xf32> to vector<2x64xf32>
    %cst_29 = arith.constant 2.000000e+00 : f32
    %58 = vector.broadcast %cst_29 : f32 to vector<2x64xf32>
    %59 = arith.mulf %58, %57 : vector<2x64xf32>
    %cst_30 = arith.constant 1.000000e+00 : f32
    %60 = vector.broadcast %cst_30 : f32 to vector<2x64xf32>
    %61 = arith.subf %59, %60 : vector<2x64xf32>
    %62 = vector.extract_strided_slice %54 {offsets = [0, 192], sizes = [2, 64], strides = [1, 1]} : vector<2x256xf32> to vector<2x64xf32>
    %63 = arith.mulf %56, %44 : vector<2x64xf32>
    %64 = arith.mulf %55, %61 : vector<2x64xf32>
    %65 = arith.addf %63, %64 : vector<2x64xf32>
    %66 = math.tanh %65 : vector<2x64xf32>
    %67 = arith.mulf %62, %66 : vector<2x64xf32>
    %c4 = arith.constant 4 : index
    %c0_31 = arith.constant 0 : index
    %68 = vector.load %arg10[%c4, %c0_31] : memref<16x256xf32, #tpu.memory_space<vmem>>, vector<2x256xf32>
    %cst_32 = arith.constant dense<0.000000e+00> : vector<2x256xf32>
    %69 = tpu.matmul %67, %23, %cst_32 {dimension_numbers = #tpu.dot_dimension_numbers<[1], [0], [0], [1], [0, 0, 1, 1], [], []>} : vector<2x64xf32>, vector<64x256xf32>, vector<2x256xf32> -> vector<2x256xf32>
    %70 = arith.addf %69, %68 : vector<2x256xf32>
    %71 = arith.negf %70 : vector<2x256xf32>
    %72 = math.exp %71 : vector<2x256xf32>
    %cst_33 = arith.constant 1.000000e+00 : f32
    %73 = vector.broadcast %cst_33 : f32 to vector<2x256xf32>
    %74 = arith.addf %73, %72 : vector<2x256xf32>
    %75 = arith.divf %73, %74 : vector<2x256xf32>
    %76 = vector.extract_strided_slice %75 {offsets = [0, 0], sizes = [2, 64], strides = [1, 1]} : vector<2x256xf32> to vector<2x64xf32>
    %77 = vector.extract_strided_slice %75 {offsets = [0, 64], sizes = [2, 64], strides = [1, 1]} : vector<2x256xf32> to vector<2x64xf32>
    %78 = vector.extract_strided_slice %75 {offsets = [0, 128], sizes = [2, 64], strides = [1, 1]} : vector<2x256xf32> to vector<2x64xf32>
    %cst_34 = arith.constant 2.000000e+00 : f32
    %79 = vector.broadcast %cst_34 : f32 to vector<2x64xf32>
    %80 = arith.mulf %79, %78 : vector<2x64xf32>
    %cst_35 = arith.constant 1.000000e+00 : f32
    %81 = vector.broadcast %cst_35 : f32 to vector<2x64xf32>
    %82 = arith.subf %80, %81 : vector<2x64xf32>
    %83 = vector.extract_strided_slice %75 {offsets = [0, 192], sizes = [2, 64], strides = [1, 1]} : vector<2x256xf32> to vector<2x64xf32>
    %84 = arith.mulf %77, %65 : vector<2x64xf32>
    %85 = arith.mulf %76, %82 : vector<2x64xf32>
    %86 = arith.addf %84, %85 : vector<2x64xf32>
    %87 = math.tanh %86 : vector<2x64xf32>
    %88 = arith.mulf %83, %87 : vector<2x64xf32>
    %c6 = arith.constant 6 : index
    %c0_36 = arith.constant 0 : index
    %89 = vector.load %arg10[%c6, %c0_36] : memref<16x256xf32, #tpu.memory_space<vmem>>, vector<2x256xf32>
    %cst_37 = arith.constant dense<0.000000e+00> : vector<2x256xf32>
    %90 = tpu.matmul %88, %23, %cst_37 {dimension_numbers = #tpu.dot_dimension_numbers<[1], [0], [0], [1], [0, 0, 1, 1], [], []>} : vector<2x64xf32>, vector<64x256xf32>, vector<2x256xf32> -> vector<2x256xf32>
    %91 = arith.addf %90, %89 : vector<2x256xf32>
    %92 = arith.negf %91 : vector<2x256xf32>
    %93 = math.exp %92 : vector<2x256xf32>
    %cst_38 = arith.constant 1.000000e+00 : f32
    %94 = vector.broadcast %cst_38 : f32 to vector<2x256xf32>
    %95 = arith.addf %94, %93 : vector<2x256xf32>
    %96 = arith.divf %94, %95 : vector<2x256xf32>
    %97 = vector.extract_strided_slice %96 {offsets = [0, 0], sizes = [2, 64], strides = [1, 1]} : vector<2x256xf32> to vector<2x64xf32>
    %98 = vector.extract_strided_slice %96 {offsets = [0, 64], sizes = [2, 64], strides = [1, 1]} : vector<2x256xf32> to vector<2x64xf32>
    %99 = vector.extract_strided_slice %96 {offsets = [0, 128], sizes = [2, 64], strides = [1, 1]} : vector<2x256xf32> to vector<2x64xf32>
    %cst_39 = arith.constant 2.000000e+00 : f32
    %100 = vector.broadcast %cst_39 : f32 to vector<2x64xf32>
    %101 = arith.mulf %100, %99 : vector<2x64xf32>
    %cst_40 = arith.constant 1.000000e+00 : f32
    %102 = vector.broadcast %cst_40 : f32 to vector<2x64xf32>
    %103 = arith.subf %101, %102 : vector<2x64xf32>
    %104 = vector.extract_strided_slice %96 {offsets = [0, 192], sizes = [2, 64], strides = [1, 1]} : vector<2x256xf32> to vector<2x64xf32>
    %105 = arith.mulf %98, %86 : vector<2x64xf32>
    %106 = arith.mulf %97, %103 : vector<2x64xf32>
    %107 = arith.addf %105, %106 : vector<2x64xf32>
    %108 = math.tanh %107 : vector<2x64xf32>
    %109 = arith.mulf %104, %108 : vector<2x64xf32>
    %c8 = arith.constant 8 : index
    %c0_41 = arith.constant 0 : index
    %110 = vector.load %arg10[%c8, %c0_41] : memref<16x256xf32, #tpu.memory_space<vmem>>, vector<2x256xf32>
    %cst_42 = arith.constant dense<0.000000e+00> : vector<2x256xf32>
    %111 = tpu.matmul %109, %23, %cst_42 {dimension_numbers = #tpu.dot_dimension_numbers<[1], [0], [0], [1], [0, 0, 1, 1], [], []>} : vector<2x64xf32>, vector<64x256xf32>, vector<2x256xf32> -> vector<2x256xf32>
    %112 = arith.addf %111, %110 : vector<2x256xf32>
    %113 = arith.negf %112 : vector<2x256xf32>
    %114 = math.exp %113 : vector<2x256xf32>
    %cst_43 = arith.constant 1.000000e+00 : f32
    %115 = vector.broadcast %cst_43 : f32 to vector<2x256xf32>
    %116 = arith.addf %115, %114 : vector<2x256xf32>
    %117 = arith.divf %115, %116 : vector<2x256xf32>
    %118 = vector.extract_strided_slice %117 {offsets = [0, 0], sizes = [2, 64], strides = [1, 1]} : vector<2x256xf32> to vector<2x64xf32>
    %119 = vector.extract_strided_slice %117 {offsets = [0, 64], sizes = [2, 64], strides = [1, 1]} : vector<2x256xf32> to vector<2x64xf32>
    %120 = vector.extract_strided_slice %117 {offsets = [0, 128], sizes = [2, 64], strides = [1, 1]} : vector<2x256xf32> to vector<2x64xf32>
    %cst_44 = arith.constant 2.000000e+00 : f32
    %121 = vector.broadcast %cst_44 : f32 to vector<2x64xf32>
    %122 = arith.mulf %121, %120 : vector<2x64xf32>
    %cst_45 = arith.constant 1.000000e+00 : f32
    %123 = vector.broadcast %cst_45 : f32 to vector<2x64xf32>
    %124 = arith.subf %122, %123 : vector<2x64xf32>
    %125 = vector.extract_strided_slice %117 {offsets = [0, 192], sizes = [2, 64], strides = [1, 1]} : vector<2x256xf32> to vector<2x64xf32>
    %126 = arith.mulf %119, %107 : vector<2x64xf32>
    %127 = arith.mulf %118, %124 : vector<2x64xf32>
    %128 = arith.addf %126, %127 : vector<2x64xf32>
    %129 = math.tanh %128 : vector<2x64xf32>
    %130 = arith.mulf %125, %129 : vector<2x64xf32>
    %c10 = arith.constant 10 : index
    %c0_46 = arith.constant 0 : index
    %131 = vector.load %arg10[%c10, %c0_46] : memref<16x256xf32, #tpu.memory_space<vmem>>, vector<2x256xf32>
    %cst_47 = arith.constant dense<0.000000e+00> : vector<2x256xf32>
    %132 = tpu.matmul %130, %23, %cst_47 {dimension_numbers = #tpu.dot_dimension_numbers<[1], [0], [0], [1], [0, 0, 1, 1], [], []>} : vector<2x64xf32>, vector<64x256xf32>, vector<2x256xf32> -> vector<2x256xf32>
    %133 = arith.addf %132, %131 : vector<2x256xf32>
    %134 = arith.negf %133 : vector<2x256xf32>
    %135 = math.exp %134 : vector<2x256xf32>
    %cst_48 = arith.constant 1.000000e+00 : f32
    %136 = vector.broadcast %cst_48 : f32 to vector<2x256xf32>
    %137 = arith.addf %136, %135 : vector<2x256xf32>
    %138 = arith.divf %136, %137 : vector<2x256xf32>
    %139 = vector.extract_strided_slice %138 {offsets = [0, 0], sizes = [2, 64], strides = [1, 1]} : vector<2x256xf32> to vector<2x64xf32>
    %140 = vector.extract_strided_slice %138 {offsets = [0, 64], sizes = [2, 64], strides = [1, 1]} : vector<2x256xf32> to vector<2x64xf32>
    %141 = vector.extract_strided_slice %138 {offsets = [0, 128], sizes = [2, 64], strides = [1, 1]} : vector<2x256xf32> to vector<2x64xf32>
    %cst_49 = arith.constant 2.000000e+00 : f32
    %142 = vector.broadcast %cst_49 : f32 to vector<2x64xf32>
    %143 = arith.mulf %142, %141 : vector<2x64xf32>
    %cst_50 = arith.constant 1.000000e+00 : f32
    %144 = vector.broadcast %cst_50 : f32 to vector<2x64xf32>
    %145 = arith.subf %143, %144 : vector<2x64xf32>
    %146 = vector.extract_strided_slice %138 {offsets = [0, 192], sizes = [2, 64], strides = [1, 1]} : vector<2x256xf32> to vector<2x64xf32>
    %147 = arith.mulf %140, %128 : vector<2x64xf32>
    %148 = arith.mulf %139, %145 : vector<2x64xf32>
    %149 = arith.addf %147, %148 : vector<2x64xf32>
    %150 = math.tanh %149 : vector<2x64xf32>
    %151 = arith.mulf %146, %150 : vector<2x64xf32>
    %c12 = arith.constant 12 : index
    %c0_51 = arith.constant 0 : index
    %152 = vector.load %arg10[%c12, %c0_51] : memref<16x256xf32, #tpu.memory_space<vmem>>, vector<2x256xf32>
    %cst_52 = arith.constant dense<0.000000e+00> : vector<2x256xf32>
    %153 = tpu.matmul %151, %23, %cst_52 {dimension_numbers = #tpu.dot_dimension_numbers<[1], [0], [0], [1], [0, 0, 1, 1], [], []>} : vector<2x64xf32>, vector<64x256xf32>, vector<2x256xf32> -> vector<2x256xf32>
    %154 = arith.addf %153, %152 : vector<2x256xf32>
    %155 = arith.negf %154 : vector<2x256xf32>
    %156 = math.exp %155 : vector<2x256xf32>
    %cst_53 = arith.constant 1.000000e+00 : f32
    %157 = vector.broadcast %cst_53 : f32 to vector<2x256xf32>
    %158 = arith.addf %157, %156 : vector<2x256xf32>
    %159 = arith.divf %157, %158 : vector<2x256xf32>
    %160 = vector.extract_strided_slice %159 {offsets = [0, 0], sizes = [2, 64], strides = [1, 1]} : vector<2x256xf32> to vector<2x64xf32>
    %161 = vector.extract_strided_slice %159 {offsets = [0, 64], sizes = [2, 64], strides = [1, 1]} : vector<2x256xf32> to vector<2x64xf32>
    %162 = vector.extract_strided_slice %159 {offsets = [0, 128], sizes = [2, 64], strides = [1, 1]} : vector<2x256xf32> to vector<2x64xf32>
    %cst_54 = arith.constant 2.000000e+00 : f32
    %163 = vector.broadcast %cst_54 : f32 to vector<2x64xf32>
    %164 = arith.mulf %163, %162 : vector<2x64xf32>
    %cst_55 = arith.constant 1.000000e+00 : f32
    %165 = vector.broadcast %cst_55 : f32 to vector<2x64xf32>
    %166 = arith.subf %164, %165 : vector<2x64xf32>
    %167 = vector.extract_strided_slice %159 {offsets = [0, 192], sizes = [2, 64], strides = [1, 1]} : vector<2x256xf32> to vector<2x64xf32>
    %168 = arith.mulf %161, %149 : vector<2x64xf32>
    %169 = arith.mulf %160, %166 : vector<2x64xf32>
    %170 = arith.addf %168, %169 : vector<2x64xf32>
    %171 = math.tanh %170 : vector<2x64xf32>
    %172 = arith.mulf %167, %171 : vector<2x64xf32>
    %c14 = arith.constant 14 : index
    %c0_56 = arith.constant 0 : index
    %173 = vector.load %arg10[%c14, %c0_56] : memref<16x256xf32, #tpu.memory_space<vmem>>, vector<2x256xf32>
    %cst_57 = arith.constant dense<0.000000e+00> : vector<2x256xf32>
    %174 = tpu.matmul %172, %23, %cst_57 {dimension_numbers = #tpu.dot_dimension_numbers<[1], [0], [0], [1], [0, 0, 1, 1], [], []>} : vector<2x64xf32>, vector<64x256xf32>, vector<2x256xf32> -> vector<2x256xf32>
    %175 = arith.addf %174, %173 : vector<2x256xf32>
    %176 = arith.negf %175 : vector<2x256xf32>
    %177 = math.exp %176 : vector<2x256xf32>
    %cst_58 = arith.constant 1.000000e+00 : f32
    %178 = vector.broadcast %cst_58 : f32 to vector<2x256xf32>
    %179 = arith.addf %178, %177 : vector<2x256xf32>
    %180 = arith.divf %178, %179 : vector<2x256xf32>
    %181 = vector.extract_strided_slice %180 {offsets = [0, 0], sizes = [2, 64], strides = [1, 1]} : vector<2x256xf32> to vector<2x64xf32>
    %182 = vector.extract_strided_slice %180 {offsets = [0, 64], sizes = [2, 64], strides = [1, 1]} : vector<2x256xf32> to vector<2x64xf32>
    %183 = vector.extract_strided_slice %180 {offsets = [0, 128], sizes = [2, 64], strides = [1, 1]} : vector<2x256xf32> to vector<2x64xf32>
    %cst_59 = arith.constant 2.000000e+00 : f32
    %184 = vector.broadcast %cst_59 : f32 to vector<2x64xf32>
    %185 = arith.mulf %184, %183 : vector<2x64xf32>
    %cst_60 = arith.constant 1.000000e+00 : f32
    %186 = vector.broadcast %cst_60 : f32 to vector<2x64xf32>
    %187 = arith.subf %185, %186 : vector<2x64xf32>
    %188 = vector.extract_strided_slice %180 {offsets = [0, 192], sizes = [2, 64], strides = [1, 1]} : vector<2x256xf32> to vector<2x64xf32>
    %189 = arith.mulf %182, %170 : vector<2x64xf32>
    %190 = arith.mulf %181, %187 : vector<2x64xf32>
    %191 = arith.addf %189, %190 : vector<2x64xf32>
    %192 = math.tanh %191 : vector<2x64xf32>
    %193 = arith.mulf %188, %192 : vector<2x64xf32>
    %c0_61 = arith.constant 0 : index
    %c0_62 = arith.constant 0 : index
    %194 = vector.load %arg7[%c0_61, %c0_62] : memref<64x128xf32, #tpu.memory_space<vmem>>, vector<64x128xf32>
    %cst_63 = arith.constant dense<0.000000e+00> : vector<2x128xf32>
    %195 = tpu.matmul %193, %194, %cst_63 {dimension_numbers = #tpu.dot_dimension_numbers<[1], [0], [0], [1], [0, 0, 1, 1], [], []>} : vector<2x64xf32>, vector<64x128xf32>, vector<2x128xf32> -> vector<2x128xf32>
    %c0_64 = arith.constant 0 : index
    %c0_65 = arith.constant 0 : index
    %196 = vector.load %arg8[%c0_64, %c0_65] : memref<1x128xf32, #tpu.memory_space<vmem>>, vector<1x128xf32>
    %197 = vector.broadcast %196 : vector<1x128xf32> to vector<2x128xf32>
    %198 = arith.addf %195, %197 : vector<2x128xf32>
    %c0_66 = arith.constant 0 : index
    %c0_67 = arith.constant 0 : index
    %199 = vector.load %arg9[%c0_66, %c0_67] : memref<2x128xf32, #tpu.memory_space<vmem>>, vector<2x128xf32>
    tpu.vector_store %arg9[%c0_66, %c0_67], %198 {strides = array<i32>} : memref<2x128xf32, #tpu.memory_space<vmem>>, vector<2x128xf32>,
    return
  }
}

</mosaic_0001>

<bundles_post_ra>
// kernel: lstm_classifier_forward.1
= control target key start
LH: loop header
LB: loop body
LE: loop exit
PB: predicated region body
PF: predicated region fallthrough
CT: control target
= control target key end

     0   :  { %14 = vsyncpa [#allocation4], 0  ;;  %s2121_s0 = inlined_call_operand.vmem [shape: s32[16,1], index: 0, kind: input, shape index: {}]   ;;  %s2122_s1 = inlined_call_operand.vmem [shape: s32[16,1], index: 1, kind: input, shape index: {}]   ;;  %s2123_s2 = inlined_call_operand.vmem [shape: f32[56,16], index: 2, kind: input, shape index: {}]   ;;  %s2124_s3 = inlined_call_operand.hbm [shape: f32[16,256], index: 3, kind: input, shape index: {}]   ;;  %s2125_s4 = inlined_call_operand.hbm [shape: f32[16,256], index: 4, kind: input, shape index: {}]   ;;  %s2126_s5 = inlined_call_operand.vmem [shape: f32[1,256], index: 5, kind: input, shape index: {}]   ;;  %s2127_s6 = inlined_call_operand.vmem [shape: f32[64,256], index: 6, kind: input, shape index: {}]   ;;  %s2128_s7 = inlined_call_operand.hbm [shape: f32[64,128], index: 7, kind: input, shape index: {}]   ;;  %s2129_s8 = inlined_call_operand.vmem [shape: f32[1,128], index: 8, kind: input, shape index: {}]   ;;  %s2130_s9 = inlined_call_operand.hbm [shape: f32[2,128], index: 9, kind: output, shape index: {}]  }
   0x1   :  { %15 = vsyncpa [#allocation7], 0 }
   0x2   :  { %16 = vsyncpa [#allocation5], 0  ;;  %s1740_s30 = smov [#allocation6]   ;;  %s1741_s11 = smov [#allocation3]  }
   0x3   :  { %s40_s10 = sshll.u32 %s1740_s30, 4  ;;  %s28_s12 = sshll.u32 %s1741_s11, 4  ;;  %s41_s10 = int_to_ptr.vmem [resolvable:$true] %s40_s10  ;;  %s29_s12 = int_to_ptr.vmem [resolvable:$true] %s28_s12 }
   0x4   :  { %s1662_s13 = scalar_lea.vmem %s41_s10, 512  ;;  %p1667_p1 = scmp.lt.s32.totalorder %s41_s10, %s41_s10 }
   0x5   :  { %p1663_p0 = scmp.ne.s32.totalorder %s41_s10, %s1662_s13  ;;  %p1668_p2 = scmp.lt.s32.totalorder %s1662_s13, %s1662_s13 }
   0x7   :  { %p1669_p3 = por %p1668_p2, %p1667_p1 }
   0x9   :  { %p1670_p4 = pnand %p1669_p3, %p1663_p0 }
   0xb   :  { %1673 = shalt.err (!%p1670_p4)
}
   0xc   :  { %s1742_s14 = smov 256   ;;  %s1743_s15 = smov 16  }
   0xd   :  { %46 = dma.hbm_to_vmem [thread:$0]  %s2125_s4, 512, %s41_s10, [#allocation7], %s1742_s14, %s1742_s14, %s1743_s15  }
   0xe   :  { %s1682_s18 = scalar_lea.vmem %s29_s12, 512  ;;  %p1687_p6 = scmp.lt.s32.totalorder %s29_s12, %s29_s12 }
   0xf   :  { %p1683_p5 = scmp.ne.s32.totalorder %s29_s12, %s1682_s18  ;;  %p1688_p7 = scmp.lt.s32.totalorder %s1682_s18, %s1682_s18 }
  0x11   :  { %p1689_p8 = por %p1688_p7, %p1687_p6 }
  0x13   :  { %p1690_p9 = pnand %p1689_p8, %p1683_p5 }
  0x15   :  { %1693 = shalt.err (!%p1690_p9)
}
  0x16   :  { %34 = dma.hbm_to_vmem [thread:$0]  %s2124_s3, 512, %s29_s12, [#allocation4], %s1742_s14, %s1742_s14, %s1743_s15  }
  0x17   :  { %s1744_s21 = smov [#allocation8]  }
  0x18   :  { %s56_s22 = sshll.u32 %s1744_s21, 4  ;;  %s57_s22 = int_to_ptr.vmem [resolvable:$true] %s56_s22 }
  0x19   :  { %s1702_s23 = scalar_lea.vmem %s57_s22, 1024  ;;  %p1707_p11 = scmp.lt.s32.totalorder %s57_s22, %s57_s22 }
  0x1a   :  { %p1703_p10 = scmp.ne.s32.totalorder %s57_s22, %s1702_s23  ;;  %p1708_p12 = scmp.lt.s32.totalorder %s1702_s23, %s1702_s23 }
  0x1c   :  { %p1709_p13 = por %p1708_p12, %p1707_p11 }
  0x1e   :  { %p1710_p0 = pnand %p1709_p13, %p1703_p10 }
  0x20   :  { %1713 = shalt.err (!%p1710_p0)
}
  0x21   :  { %s1745_s4 = smov 128   ;;  %s1746_s24 = smov 8  }
  0x22   :  { %62 = dma.hbm_to_vmem [thread:$0]  %s2128_s7, 1024, %s57_s22, [#allocation7], %s1745_s4, %s1745_s4, %s1746_s24  }
  0x23   :  { %1734 = dma.done.wait [#allocation4], 512  }
  0x24   :  { %1735 = vsyncadd [#allocation4], 4294966784 }
  0x25   :  { %1736 = dma.done.wait [#allocation7], 1536  }
  0x26   :  { %1737 = vsyncadd [#allocation7], 4294965760  ;;  %v1747_v0 = vmov 0   ;;  %v90_v1 = vld [vmem:[%s2122_s1] sm:$0xff]  ;;  %v110_v3 = vld [vmem:[%s2123_s2 + $0x30] sm:$0xff]  ;;  %v74_v13 = vlaneseq  ;;  %vm111_vm0 = vcmask 457728  }
  0x27   :  { %1572 = vset.pattern.permute.xlu0 %v1747_v0  ;;  %1573 = vset.pattern.permute.xlu1 %v1747_v0  ;;  %v76_v2 = vld [vmem:[%s2121_s0] sm:$0xff]  ;;  %v109_v4 = vld [vmem:[%s2123_s2 + $0x28] sm:$0xff]  ;;  %v107_v8 = vld [vmem:[%s2123_s2 + $0x18] sm:$0xff]  ;;  %v1748_v17 = vmov 0.0   ;;  %vm282_vm5 = vcmask 130048   ;;  %vm487_vm6 = vcmask 523264  }
  0x28   :  { %93 = vperm.xlu0 %1572, %v90_v1   ;;  %79 = vperm.xlu1 %1573, %v76_v2   ;;  %v91_v5 = vld [vmem:[%s2122_s1 + $0x8] sm:$0xff]  ;;  %v108_v7 = vld [vmem:[%s2123_s2 + $0x20] sm:$0xff]  ;;  %v106_v9 = vld [vmem:[%s2123_s2 + $0x10] sm:$0xff]  ;;  %v75_v14 = vand.u32 127, %v74_v13  ;;  %v452_v51 = vshrl.u32 %v74_v13, 7  ;;  %vm1750_vm7 = vmmov 0  }
  0x29   :  { %v77_v6 = vld [vmem:[%s2121_s0 + $0x8] sm:$0xff]  ;;  %1524 = vmatprep.subr.mxu1 %v110_v3  ;;  %1507 = vmatprep.subr.mxu0 %v110_v3  ;;  %v104_v11 = vld [vmem:[%s2123_s2] sm:$0xff]  ;;  %v281_v12 = vld [vmem:[#allocation6 + $0x18] sm:$0xff]  ;;  %s1751_s29 = smov [#allocation9]  }
  0x2a   :  { %1525 = vmatpush3.msra.mxu1 %v110_v3  ;;  %1508 = vmatpush3.msra.mxu0 %v110_v3  ;;  %v105_v10 = vld [vmem:[%s2123_s2 + $0x8] sm:$0xff]  ;;  %v280_v22 = vld [vmem:[#allocation6 + $0x10] sm:$0xff]  ;;  %v278_v26 = vld [vmem:[#allocation6] sm:$0xff]  ;;  %v453_v54 = vsub.s32 0, %v452_v51  ;;  %v457_v57 = vsub.s32 1, %v452_v51  ;;  %s1425_s30 = sshll.u32 %s1751_s29, 4  ;;  %s1426_s30 = int_to_ptr.vmem [resolvable:$true] %s1425_s30 }
  0x2b   :  { %1526 = vmatprep.subr.mxu1 %v109_v4  ;;  %1509 = vmatprep.subr.mxu0 %v109_v4  ;;  %v279_v25 = vld [vmem:[#allocation6 + $0x8] sm:$0xff]  ;;  %v277_v27 = vld [vmem:[#allocation3 + $0x18] sm:$0xff]  ;;  %v1864_v29 = vld [vmem:[%s2127_s6 + $0x70] sm:$0xff]  ;;  %s1714_s10 = scalar_lea.vmem %s1426_s30, 32  ;;  %p1719_p2 = scmp.lt.s32.totalorder %s1426_s30, %s1426_s30 }
  0x2c   :  { %96 = vperm.xlu0 %1572, %v91_v5   ;;  %82 = vperm.xlu1 %1573, %v77_v6   ;;  %v1858_v28 = vld [vmem:[%s2127_s6 + $0x78] sm:$0xff]  ;;  %v1870_v30 = vld [vmem:[%s2127_s6 + $0x68] sm:$0xff]  ;;  %v1876_v31 = vld [vmem:[%s2127_s6 + $0x60] sm:$0xff]  ;;  %p1715_p1 = scmp.ne.s32.totalorder %s1426_s30, %s1714_s10  ;;  %p1720_p3 = scmp.lt.s32.totalorder %s1714_s10, %s1714_s10 }
  0x2d   :  { %1527 = vmatpush3.msra.mxu1 %v109_v4  ;;  %1510 = vmatpush3.msra.mxu0 %v109_v4  ;;  %v1881_v32 = vld [vmem:[%s2127_s6 + $0x58] sm:$0xff]  ;;  %v1887_v33 = vld [vmem:[%s2127_s6 + $0x50] sm:$0xff]  ;;  %v1894_v34 = vld [vmem:[%s2127_s6 + $0x48] sm:$0xff] }
  0x2e   :  { %1528 = vmatprep.subr.mxu1 %v108_v7  ;;  %1511 = vmatprep.subr.mxu0 %v108_v7  ;;  %v1900_v35 = vld [vmem:[%s2127_s6 + $0x40] sm:$0xff]  ;;  %v1905_v36 = vld [vmem:[%s2127_s6 + $0x38] sm:$0xff]  ;;  %v1911_v37 = vld [vmem:[%s2127_s6 + $0x30] sm:$0xff]  ;;  %p1721_p4 = por %p1720_p3, %p1719_p2 }
  0x2f   :  { %1529 = vmatpush3.msra.mxu1 %v108_v7  ;;  %1512 = vmatpush3.msra.mxu0 %v108_v7  ;;  %v1918_v38 = vld [vmem:[%s2127_s6 + $0x28] sm:$0xff]  ;;  %v1924_v39 = vld [vmem:[%s2127_s6 + $0x20] sm:$0xff]  ;;  %v1929_v40 = vld [vmem:[%s2127_s6 + $0x18] sm:$0xff] }
  0x30   :  { %1530 = vmatprep.subr.mxu1 %v107_v8  ;;  %1513 = vmatprep.subr.mxu0 %v107_v8  ;;  %v1934_v41 = vld [vmem:[%s2127_s6 + $0x10] sm:$0xff]  ;;  %v1940_v42 = vld [vmem:[%s2127_s6 + $0x8] sm:$0xff]  ;;  %v1946_v43 = vld [vmem:[%s2127_s6] sm:$0xff]  ;;  %p1722_p5 = pnand %p1721_p4, %p1715_p1 }
  0x31   :  { %1531 = vmatpush3.msra.mxu1 %v107_v8  ;;  %1514 = vmatpush3.msra.mxu0 %v107_v8  ;;  %v276_v45 = vld [vmem:[#allocation3 + $0x10] sm:$0xff]  ;;  %v275_v47 = vld [vmem:[#allocation3 + $0x8] sm:$0xff]  ;;  %v274_v48 = vld [vmem:[#allocation3] sm:$0xff] }
  0x32   :  { %1532 = vmatprep.subr.mxu1 %v106_v9  ;;  %1515 = vmatprep.subr.mxu0 %v106_v9  ;;  %v449_v56 = vld [vmem:[%s2126_s5] sm:$0x3]  ;;  %s1749_s5 = smov 64  }
  0x33   :  { %1533 = vmatpush3.msra.mxu1 %v106_v9  ;;  %1516 = vmatpush3.msra.mxu0 %v106_v9  ;;  %v454_v59 = vrot.slane %v449_v56, %v453_v54  ;;  %v458_v62 = vrot.slane %v449_v56, %v457_v57 }
  0x34   :  { %1534 = vmatprep.subr.mxu1 %v105_v10  ;;  %1517 = vmatprep.subr.mxu0 %v105_v10 }
  0x35   :  { %1535 = vmatpush3.msra.mxu1 %v105_v10  ;;  %1518 = vmatpush3.msra.mxu0 %v105_v10 }
  0x36   :  { %1536 = vmatprep.subr.mxu1 %v104_v11  ;;  %1519 = vmatprep.subr.mxu0 %v104_v11 }
  0x37   :  { %1537 = vmatpush3.msra.mxu1 %v104_v11  ;;  %1520 = vmatpush3.msra.mxu0 %v104_v11 }
  0x38   :  { %317 = vmatprep.subr.mxu1 %v281_v12  ;;  %507 = vmatprep.subr.mxu0 %v1858_v28 }
  0xa3   :  { %v94_v15 = vpop.permute.xlu0 %93  ;;  %v80_v16 = vpop.permute.xlu1 %79 }
  0xa4   :  { %vm98_vm1 = vcmp.eq.s32.totalorder %v94_v15, %v75_v14  ;;  %vm84_vm2 = vcmp.eq.s32.totalorder %v80_v16, %v75_v14 }
  0xa5   :  { %v1437_v18 = vsel %vm98_vm1, 1.0, %v1748_v17  ;;  %v1435_v19 = vsel %vm84_vm2, 1.0, %v1748_v17 }
  0xa6   :  { %1538 = vmatprep.mubr.msk.f32.mxu1 %vm111_vm0, %v1437_v18  ;;  %1521 = vmatprep.mubr.msk.f32.mxu0 %vm111_vm0, %v1435_v19 }
  0xa7   :  { %v97_v20 = vpop.permute.xlu0 %96  ;;  %v83_v21 = vpop.permute.xlu1 %82 }
  0xa8   :  { %vm99_vm3 = vcmp.eq.s32.totalorder %v97_v20, %v75_v14  ;;  %vm85_vm4 = vcmp.eq.s32.totalorder %v83_v21, %v75_v14 }
  0xa9   :  { %v1438_v23 = vsel %vm99_vm3, 1.0, %v1748_v17  ;;  %v1436_v24 = vsel %vm85_vm4, 1.0, %v1748_v17 }
  0xaa   :  { %1539 = vmatmul.mubr.msk.f32.vlgmr.msra.gmra.mxu1 %vm111_vm0, %v1438_v23  ;;  %1522 = vmatmul.mubr.msk.f32.vlgmr.msra.gmra.mxu0 %vm111_vm0, %v1436_v24 }
  0xab   :  { %318 = vmatpush1.msra.mxu1 %v280_v22  ;;  %353 = vmatprep.mubr.f32.mxu1 %v1748_v17 }
  0xac   :  { %555 = vmatprep.mubr.f32.mxu0 %v1748_v17  ;;  %319 = vmatprep.subr.mxu1 %v279_v25 }
  0xad   :  { %320 = vmatpush1.msra.mxu1 %v278_v26  ;;  %508 = vmatpush1.msra.mxu0 %v1864_v29 }
  0xae   :  { %400 = vmatprep.subr.mxu1 %v277_v27  ;;  %509 = vmatprep.subr.mxu0 %v1870_v30 }
  0xaf   :  { %510 = vmatpush1.msra.mxu0 %v1876_v31 }
  0xb0   :  { %511 = vmatprep.subr.mxu0 %v1881_v32 }
  0xb1   :  { %512 = vmatpush1.msra.mxu0 %v1887_v33 }
  0xb2   :  { %513 = vmatprep.subr.mxu0 %v1894_v34 }
  0xb3   :  { %514 = vmatpush1.msra.mxu0 %v1900_v35 }
  0xb4   :  { %515 = vmatprep.subr.mxu0 %v1905_v36 }
  0xb5   :  { %516 = vmatpush1.msra.mxu0 %v1911_v37 }
  0xb6   :  { %517 = vmatprep.subr.mxu0 %v1918_v38 }
  0xb7   :  { %518 = vmatpush1.msra.mxu0 %v1924_v39 }
  0xb8   :  { %519 = vmatprep.subr.mxu0 %v1929_v40 }
  0xb9   :  { %520 = vmatpush1.msra.mxu0 %v1934_v41 }
  0xba   :  { %521 = vmatprep.subr.mxu0 %v1940_v42 }
  0xbb   :  { %522 = vmatpush1.msra.mxu0 %v1946_v43 }
  0xbc   :  { %556 = vmatmul.mubr.f32.vlgmr.msra.gmra.mxu0 %v1748_v17  ;;  %721 = vmatprep.subr.mxu0 %v1858_v28 }
  0xbd   :  { %722 = vmatpush1.msra.mxu0 %v1864_v29  ;;  %769 = vmatprep.mubr.f32.mxu0 %v1748_v17 }
  0xbe   :  { %723 = vmatprep.subr.mxu0 %v1870_v30 }
  0xbf   :  { %724 = vmatpush1.msra.mxu0 %v1876_v31 }
  0xc0   :  { %725 = vmatprep.subr.mxu0 %v1881_v32 }
  0xc1   :  { %726 = vmatpush1.msra.mxu0 %v1887_v33 }
  0xc2   :  { %727 = vmatprep.subr.mxu0 %v1894_v34 }
  0xc3   :  { %728 = vmatpush1.msra.mxu0 %v1900_v35 }
  0xc4   :  { %729 = vmatprep.subr.mxu0 %v1905_v36 }
  0xc5   :  { %730 = vmatpush1.msra.mxu0 %v1911_v37 }
  0xc6   :  { %731 = vmatprep.subr.mxu0 %v1918_v38 }
  0xc7   :  { %732 = vmatpush1.msra.mxu0 %v1924_v39 }
  0xc8   :  { %733 = vmatprep.subr.mxu0 %v1929_v40 }
  0xc9   :  { %734 = vmatpush1.msra.mxu0 %v1934_v41 }
  0xca   :  { %735 = vmatprep.subr.mxu0 %v1940_v42 }
  0xcb   :  { %736 = vmatpush1.msra.mxu0 %v1946_v43 }
  0xcc   :  { %929 = vmatprep.subr.mxu0 %v1858_v28 }
 0x16a   :  { %v1540_v44 = vpop.f32.mrf.mxu1  ;;  %v1523_v49 = vpop.f32.mrf.mxu0 }
 0x16c   :  { %v265_v46 = vpop.f32.mrf.mxu1  ;;  %v184_v50 = vpop.f32.mrf.mxu0 }
 0x16d   :  { %1443 = vmatmul.mubr.msk.f32.vlgmr.msra.gmra.mxu1 %vm282_vm5, %v265_v46 }
 0x16e   :  { %401 = vmatpush1.msra.mxu1 %v276_v45  ;;  %359 = vmatprep.mubr.f32.mxu1 %v1748_v17 }
 0x16f   :  { %402 = vmatprep.subr.mxu1 %v275_v47 }
 0x170   :  { %403 = vmatpush1.msra.mxu1 %v274_v48 }
 0x171   :  { %1444 = vmatmul.mubr.msk.f32.gmra.mxu1 %vm282_vm5, %v1540_v44  ;;  %614 = vmatprep.subr.mxu1 %v1858_v28 }
 0x172   :  { %436 = vmatprep.mubr.f32.mxu1 %v1748_v17 }
 0x175   :  { %1445 = vmatmul.mubr.msk.f32.vlgmr.msra.gmra.mxu1 %vm282_vm5, %v184_v50 }
 0x176   :  { %442 = vmatprep.mubr.f32.mxu1 %v1748_v17  ;;  %615 = vmatpush1.msra.mxu1 %v1864_v29 }
 0x177   :  { %616 = vmatprep.subr.mxu1 %v1870_v30 }
 0x178   :  { %617 = vmatpush1.msra.mxu1 %v1876_v31 }
 0x179   :  { %1446 = vmatmul.mubr.msk.f32.gmra.mxu1 %vm282_vm5, %v1523_v49  ;;  %618 = vmatprep.subr.mxu1 %v1881_v32 }
 0x17a   :  { %619 = vmatpush1.msra.mxu1 %v1887_v33  ;;  %662 = vmatprep.mubr.f32.mxu1 %v1748_v17 }
 0x17b   :  { %620 = vmatprep.subr.mxu1 %v1894_v34 }
 0x17c   :  { %621 = vmatpush1.msra.mxu1 %v1900_v35  ;;  %v557_v9 = vpop.f32.mrf.mxu0 }
 0x17d   :  { %622 = vmatprep.subr.mxu1 %v1905_v36 }
 0x17e   :  { %623 = vmatpush1.msra.mxu1 %v1911_v37  ;;  %v559_v13 = vpop.f32.mrf.mxu0 }
 0x17f   :  { %624 = vmatprep.subr.mxu1 %v1918_v38 }
 0x180   :  { %625 = vmatpush1.msra.mxu1 %v1924_v39 }
 0x181   :  { %626 = vmatprep.subr.mxu1 %v1929_v40 }
 0x182   :  { %627 = vmatpush1.msra.mxu1 %v1934_v41 }
 0x183   :  { %628 = vmatprep.subr.mxu1 %v1940_v42 }
 0x184   :  { %629 = vmatpush1.msra.mxu1 %v1946_v43 }
 0x185   :  { %828 = vmatprep.subr.mxu1 %v1858_v28 }
 0x22d   :  { %v355_v52 = vpop.f32.mrf.mxu1 }
 0x22f   :  { %v357_v53 = vpop.f32.mrf.mxu1 }
 0x231   :  { %v361_v55 = vpop.f32.mrf.mxu1 }
 0x233   :  { %v363_v58 = vpop.f32.mrf.mxu1 }
 0x235   :  { %v438_v60 = vpop.f32.mrf.mxu1 }
 0x236   :  { %v439_v61 = vadd.f32 %v438_v60, %v355_v52 }
 0x237   :  { %v440_v63 = vpop.f32.mrf.mxu1 }
 0x238   :  { %v461_v0 = vadd.f32 %v454_v59, %v439_v61  ;;  %v441_v1 = vadd.f32 %v440_v63, %v357_v53 }
 0x239   :  { %v444_v2 = vpop.f32.mrf.mxu1 }
 0x23a   :  { %465 = vst [vmem:[#allocation2 + $0x10] sm:$0xff] %v461_v0  ;;  %v462_v3 = vadd.f32 %v458_v62, %v441_v1  ;;  %v445_v4 = vadd.f32 %v444_v2, %v361_v55 }
 0x23b   :  { %v446_v5 = vpop.f32.mrf.mxu1 }
 0x23c   :  { %466 = vst [vmem:[#allocation2] sm:$0xff] %v462_v3  ;;  %v463_v6 = vadd.f32 %v454_v59, %v445_v4  ;;  %v447_v7 = vadd.f32 %v446_v5, %v363_v58 }
 0x23e   :  { %467 = vst [vmem:[#allocation2 + $0x18] sm:$0xff] %v463_v6  ;;  %v464_v8 = vadd.f32 %v458_v62, %v447_v7 }
 0x240   :  { %468 = vst [vmem:[#allocation2 + $0x8] sm:$0xff] %v464_v8 }
 0x241   :  { %v485_v10 = vld [vmem:[#allocation2 + $0x10] sm:$0x3]  ;;  %v585_v49 = vld [vmem:[#allocation2 + $0x10] sm:$0xc] }
 0x242   :  { %v558_v11 = vadd.f32 %v557_v9, %v485_v10  ;;  %v592_v51 = vrot.slane %v585_v49, 2  ;;  %v692_v10 = vld [vmem:[#allocation2 + $0x10] sm:$0x30] }
 0x243   :  { %v486_v12 = vld [vmem:[#allocation2] sm:$0x3]  ;;  %v586_v50 = vld [vmem:[#allocation2] sm:$0xc] }
 0x244   :  { %v1447_v14 = vmul.f32 -1.442695, %v558_v11  ;;  %v560_v15 = vadd.f32 %v559_v13, %v486_v12  ;;  %v593_v54 = vrot.slane %v586_v50, 2  ;;  %v693_v11 = vld [vmem:[#allocation2] sm:$0x30]  ;;  %v699_v12 = vrot.slane %v692_v10, 4 }
 0x246   :  { %v1448_v16 = vmul.f32 -1.442695, %v560_v15  ;;  %1574 = vpow2.f32 %v1447_v14  ;;  %v700_v15 = vrot.slane %v693_v11, 4 }
 0x248   :  { %1576 = vpow2.f32 %v1448_v16 }
 0x253   :  { %v1575_v18 = vpop.eup %1574 }
 0x254   :  { %v568_v21 = vadd.f32 1.0, %v1575_v18 }
 0x255   :  { %v1577_v19 = vpop.eup %1576 }
 0x256   :  { %v569_v20 = vadd.f32 1.0, %v1577_v19 }
 0x258   :  { %1578 = vrcp.f32 %v569_v20 }
 0x259   :  { %1580 = vrcp.f32 %v568_v21 }
 0x265   :  { %v1579_v22 = vpop.eup %1578 }
 0x266   :  { %v574_v23 = vmul.f32 2.0, %v1579_v22  ;;  %v1581_v25 = vpop.eup %1580 }
 0x267   :  { %v576_v27 = vmul.f32 0.0, %v1581_v25 }
 0x268   :  { %v1449_v24 = vadd.f32 -1.0, %v574_v23 }
 0x26a   :  { %v577_v26 = vmul.f32 %v1581_v25, %v1449_v24 }
 0x26c   :  { %579 = vrot.lane.b32.xlu0 %v577_v26, %s1749_s5 }
 0x2de   :  { %v580_v44 = vpop.permute.xlu0 %579 }
 0x2df   :  { %v582_v45 = vadd.f32 %v580_v44, %v576_v27 }
 0x2e1   :  { %1582 = vtanh.f32 %v582_v45 }
 0x2ee   :  { %v1583_v46 = vpop.eup %1582 }
 0x2ef   :  { %v584_v47 = vmul.f32 %v1583_v46, %v1579_v22 }
 0x2f1   :  { %588 = vrot.lane.b32.xlu1 %v584_v47, %s1749_s5 }
 0x363   :  { %v589_v48 = vpop.permute.xlu1 %588 }
 0x364   :  { %1450 = vmatmul.mubr.msk.f32.vlgmr.msra.gmra.mxu1 %vm487_vm6, %v589_v48 }
 0x365   :  { %829 = vmatpush1.msra.mxu1 %v1864_v29  ;;  %876 = vmatprep.mubr.f32.mxu1 %v1748_v17 }
 0x366   :  { %830 = vmatprep.subr.mxu1 %v1870_v30 }
 0x367   :  { %831 = vmatpush1.msra.mxu1 %v1876_v31 }
 0x368   :  { %832 = vmatprep.subr.mxu1 %v1881_v32 }
 0x369   :  { %833 = vmatpush1.msra.mxu1 %v1887_v33 }
 0x36a   :  { %834 = vmatprep.subr.mxu1 %v1894_v34 }
 0x36b   :  { %835 = vmatpush1.msra.mxu1 %v1900_v35 }
 0x36c   :  { %836 = vmatprep.subr.mxu1 %v1905_v36 }
 0x36d   :  { %837 = vmatpush1.msra.mxu1 %v1911_v37 }
 0x36e   :  { %838 = vmatprep.subr.mxu1 %v1918_v38 }
 0x36f   :  { %839 = vmatpush1.msra.mxu1 %v1924_v39 }
 0x370   :  { %840 = vmatprep.subr.mxu1 %v1929_v40 }
 0x371   :  { %841 = vmatpush1.msra.mxu1 %v1934_v41 }
 0x372   :  { %842 = vmatprep.subr.mxu1 %v1940_v42 }
 0x373   :  { %843 = vmatpush1.msra.mxu1 %v1946_v43 }
 0x374   :  { %1036 = vmatprep.subr.mxu1 %v1858_v28 }
 0x424   :  { %v664_v52 = vpop.f32.mrf.mxu1 }
 0x425   :  { %v665_v53 = vadd.f32 %v664_v52, %v592_v51  ;;  %v799_v52 = vld [vmem:[#allocation2 + $0x10] sm:$0xc0] }
 0x426   :  { %v666_v55 = vpop.f32.mrf.mxu1 }
 0x427   :  { %v1451_v56 = vmul.f32 -1.442695, %v665_v53  ;;  %v667_v57 = vadd.f32 %v666_v55, %v593_v54  ;;  %v800_v53 = vld [vmem:[#allocation2] sm:$0xc0]  ;;  %v806_v54 = vrot.slane %v799_v52, 6 }
 0x429   :  { %v1452_v58 = vmul.f32 -1.442695, %v667_v57  ;;  %1584 = vpow2.f32 %v1451_v56  ;;  %v807_v57 = vrot.slane %v800_v53, 6 }
 0x42b   :  { %1586 = vpow2.f32 %v1452_v58 }
 0x436   :  { %v1585_v59 = vpop.eup %1584 }
 0x437   :  { %v675_v62 = vadd.f32 1.0, %v1585_v59 }
 0x438   :  { %v1587_v60 = vpop.eup %1586 }
 0x439   :  { %v676_v61 = vadd.f32 1.0, %v1587_v60 }
 0x43b   :  { %1588 = vrcp.f32 %v676_v61 }
 0x43c   :  { %1590 = vrcp.f32 %v675_v62 }
 0x448   :  { %v1589_v63 = vpop.eup %1588 }
 0x449   :  { %v681_v0 = vmul.f32 2.0, %v1589_v63  ;;  %v1591_v2 = vpop.eup %1590 }
 0x44a   :  { %v683_v4 = vmul.f32 %v1591_v2, %v582_v45 }
 0x44b   :  { %v1453_v1 = vadd.f32 -1.0, %v681_v0 }
 0x44d   :  { %v684_v3 = vmul.f32 %v1591_v2, %v1453_v1 }
 0x44f   :  { %686 = vrot.lane.b32.xlu0 %v684_v3, %s1749_s5 }
 0x4c1   :  { %v687_v5 = vpop.permute.xlu0 %686 }
 0x4c2   :  { %v689_v6 = vadd.f32 %v687_v5, %v683_v4 }
 0x4c4   :  { %1592 = vtanh.f32 %v689_v6 }
 0x4d1   :  { %v1593_v7 = vpop.eup %1592 }
 0x4d2   :  { %v691_v8 = vmul.f32 %v1593_v7, %v1589_v63 }
 0x4d4   :  { %695 = vrot.lane.b32.xlu1 %v691_v8, %s1749_s5 }
 0x546   :  { %v696_v9 = vpop.permute.xlu1 %695 }
 0x547   :  { %1454 = vmatmul.mubr.msk.f32.vlgmr.msra.gmra.mxu0 %vm487_vm6, %v696_v9 }
 0x548   :  { %930 = vmatpush1.msra.mxu0 %v1864_v29  ;;  %977 = vmatprep.mubr.f32.mxu0 %v1748_v17 }
 0x549   :  { %931 = vmatprep.subr.mxu0 %v1870_v30 }
 0x54a   :  { %932 = vmatpush1.msra.mxu0 %v1876_v31 }
 0x54b   :  { %933 = vmatprep.subr.mxu0 %v1881_v32 }
 0x54c   :  { %934 = vmatpush1.msra.mxu0 %v1887_v33 }
 0x54d   :  { %935 = vmatprep.subr.mxu0 %v1894_v34 }
 0x54e   :  { %936 = vmatpush1.msra.mxu0 %v1900_v35 }
 0x54f   :  { %937 = vmatprep.subr.mxu0 %v1905_v36 }
 0x550   :  { %938 = vmatpush1.msra.mxu0 %v1911_v37 }
 0x551   :  { %939 = vmatprep.subr.mxu0 %v1918_v38 }
 0x552   :  { %940 = vmatpush1.msra.mxu0 %v1924_v39 }
 0x553   :  { %941 = vmatprep.subr.mxu0 %v1929_v40 }
 0x554   :  { %942 = vmatpush1.msra.mxu0 %v1934_v41 }
 0x555   :  { %943 = vmatprep.subr.mxu0 %v1940_v42 }
 0x556   :  { %944 = vmatpush1.msra.mxu0 %v1946_v43 }
 0x557   :  { %1143 = vmatprep.subr.mxu0 %v1858_v28 }
 0x607   :  { %v771_v13 = vpop.f32.mrf.mxu0 }
 0x608   :  { %v772_v14 = vadd.f32 %v771_v13, %v699_v12  ;;  %v906_v12 = vld [vmem:[#allocation2 + $0x18] sm:$0x3] }
 0x609   :  { %v773_v16 = vpop.f32.mrf.mxu0 }
 0x60a   :  { %v1455_v18 = vmul.f32 -1.442695, %v772_v14  ;;  %v774_v19 = vadd.f32 %v773_v16, %v700_v15  ;;  %v907_v15 = vld [vmem:[#allocation2 + $0x8] sm:$0x3] }
 0x60c   :  { %v1456_v20 = vmul.f32 -1.442695, %v774_v19  ;;  %1594 = vpow2.f32 %v1455_v18 }
 0x60e   :  { %1596 = vpow2.f32 %v1456_v20 }
 0x619   :  { %v1595_v21 = vpop.eup %1594 }
 0x61a   :  { %v782_v24 = vadd.f32 1.0, %v1595_v21 }
 0x61b   :  { %v1597_v22 = vpop.eup %1596 }
 0x61c   :  { %v783_v23 = vadd.f32 1.0, %v1597_v22 }
 0x61e   :  { %1598 = vrcp.f32 %v783_v23 }
 0x61f   :  { %1600 = vrcp.f32 %v782_v24 }
 0x62b   :  { %v1599_v25 = vpop.eup %1598 }
 0x62c   :  { %v788_v26 = vmul.f32 2.0, %v1599_v25  ;;  %v1601_v44 = vpop.eup %1600 }
 0x62d   :  { %v790_v46 = vmul.f32 %v1601_v44, %v689_v6 }
 0x62e   :  { %v1457_v27 = vadd.f32 -1.0, %v788_v26 }
 0x630   :  { %v791_v45 = vmul.f32 %v1601_v44, %v1457_v27 }
 0x632   :  { %793 = vrot.lane.b32.xlu0 %v791_v45, %s1749_s5 }
 0x6a4   :  { %v794_v47 = vpop.permute.xlu0 %793 }
 0x6a5   :  { %v796_v48 = vadd.f32 %v794_v47, %v790_v46 }
 0x6a7   :  { %1602 = vtanh.f32 %v796_v48 }
 0x6b4   :  { %v1603_v49 = vpop.eup %1602 }
 0x6b5   :  { %v798_v50 = vmul.f32 %v1603_v49, %v1599_v25 }
 0x6b7   :  { %802 = vrot.lane.b32.xlu1 %v798_v50, %s1749_s5 }
 0x729   :  { %v803_v51 = vpop.permute.xlu1 %802 }
 0x72a   :  { %1458 = vmatmul.mubr.msk.f32.vlgmr.msra.gmra.mxu1 %vm487_vm6, %v803_v51 }
 0x72b   :  { %1037 = vmatpush1.msra.mxu1 %v1864_v29  ;;  %1084 = vmatprep.mubr.f32.mxu1 %v1748_v17 }
 0x72c   :  { %1038 = vmatprep.subr.mxu1 %v1870_v30 }
 0x72d   :  { %1039 = vmatpush1.msra.mxu1 %v1876_v31 }
 0x72e   :  { %1040 = vmatprep.subr.mxu1 %v1881_v32 }
 0x72f   :  { %1041 = vmatpush1.msra.mxu1 %v1887_v33 }
 0x730   :  { %1042 = vmatprep.subr.mxu1 %v1894_v34 }
 0x731   :  { %1043 = vmatpush1.msra.mxu1 %v1900_v35 }
 0x732   :  { %1044 = vmatprep.subr.mxu1 %v1905_v36 }
 0x733   :  { %1045 = vmatpush1.msra.mxu1 %v1911_v37 }
 0x734   :  { %1046 = vmatprep.subr.mxu1 %v1918_v38 }
 0x735   :  { %1047 = vmatpush1.msra.mxu1 %v1924_v39 }
 0x736   :  { %1048 = vmatprep.subr.mxu1 %v1929_v40 }
 0x737   :  { %1049 = vmatpush1.msra.mxu1 %v1934_v41 }
 0x738   :  { %1050 = vmatprep.subr.mxu1 %v1940_v42 }
 0x739   :  { %1051 = vmatpush1.msra.mxu1 %v1946_v43 }
 0x73a   :  { %1250 = vmatprep.subr.mxu1 %v1858_v28 }
 0x7ea   :  { %v878_v55 = vpop.f32.mrf.mxu1 }
 0x7eb   :  { %v879_v56 = vadd.f32 %v878_v55, %v806_v54 }
 0x7ec   :  { %v880_v58 = vpop.f32.mrf.mxu1 }
 0x7ed   :  { %v1459_v59 = vmul.f32 -1.442695, %v879_v56  ;;  %v881_v60 = vadd.f32 %v880_v58, %v807_v57 }
 0x7ef   :  { %v1460_v61 = vmul.f32 -1.442695, %v881_v60  ;;  %1604 = vpow2.f32 %v1459_v59 }
 0x7f1   :  { %1606 = vpow2.f32 %v1460_v61 }
 0x7fc   :  { %v1605_v62 = vpop.eup %1604 }
 0x7fd   :  { %v889_v1 = vadd.f32 1.0, %v1605_v62  ;;  %v1114_v62 = vld [vmem:[#allocation2 + $0x18] sm:$0x30] }
 0x7fe   :  { %v1607_v63 = vpop.eup %1606 }
 0x7ff   :  { %v890_v0 = vadd.f32 1.0, %v1607_v63  ;;  %v1115_v63 = vld [vmem:[#allocation2 + $0x8] sm:$0x30] }
 0x801   :  { %1608 = vrcp.f32 %v890_v0  ;;  %v1121_v0 = vrot.slane %v1114_v62, 4 }
 0x802   :  { %1610 = vrcp.f32 %v889_v1 }
 0x80e   :  { %v1609_v2 = vpop.eup %1608 }
 0x80f   :  { %v895_v28 = vmul.f32 2.0, %v1609_v2  ;;  %v1611_v4 = vpop.eup %1610 }
 0x810   :  { %v897_v6 = vmul.f32 %v1611_v4, %v796_v48 }
 0x811   :  { %v1461_v3 = vadd.f32 -1.0, %v895_v28  ;;  %v1122_v28 = vrot.slane %v1115_v63, 4 }
 0x813   :  { %v898_v5 = vmul.f32 %v1611_v4, %v1461_v3 }
 0x815   :  { %900 = vrot.lane.b32.xlu0 %v898_v5, %s1749_s5 }
 0x887   :  { %v901_v7 = vpop.permute.xlu0 %900 }
 0x888   :  { %v903_v8 = vadd.f32 %v901_v7, %v897_v6 }
 0x88a   :  { %1612 = vtanh.f32 %v903_v8 }
 0x897   :  { %v1613_v9 = vpop.eup %1612 }
 0x898   :  { %v905_v10 = vmul.f32 %v1613_v9, %v1609_v2 }
 0x89a   :  { %909 = vrot.lane.b32.xlu1 %v905_v10, %s1749_s5 }
 0x90c   :  { %v910_v11 = vpop.permute.xlu1 %909 }
 0x90d   :  { %1462 = vmatmul.mubr.msk.f32.vlgmr.msra.gmra.mxu0 %vm487_vm6, %v910_v11 }
 0x90e   :  { %1144 = vmatpush1.msra.mxu0 %v1864_v29  ;;  %1191 = vmatprep.mubr.f32.mxu0 %v1748_v17 }
 0x90f   :  { %1145 = vmatprep.subr.mxu0 %v1870_v30 }
 0x910   :  { %1146 = vmatpush1.msra.mxu0 %v1876_v31 }
 0x911   :  { %1147 = vmatprep.subr.mxu0 %v1881_v32 }
 0x912   :  { %1148 = vmatpush1.msra.mxu0 %v1887_v33 }
 0x913   :  { %1149 = vmatprep.subr.mxu0 %v1894_v34 }
 0x914   :  { %1150 = vmatpush1.msra.mxu0 %v1900_v35 }
 0x915   :  { %1151 = vmatprep.subr.mxu0 %v1905_v36 }
 0x916   :  { %1152 = vmatpush1.msra.mxu0 %v1911_v37 }
 0x917   :  { %1153 = vmatprep.subr.mxu0 %v1918_v38 }
 0x918   :  { %1154 = vmatpush1.msra.mxu0 %v1924_v39 }
 0x919   :  { %1155 = vmatprep.subr.mxu0 %v1929_v40 }
 0x91a   :  { %1156 = vmatpush1.msra.mxu0 %v1934_v41 }
 0x91b   :  { %1157 = vmatprep.subr.mxu0 %v1940_v42 }
 0x91c   :  { %1158 = vmatpush1.msra.mxu0 %v1946_v43 }
 0x91d   :  { %1541 = vmatprep.subr.mxu0 %v1748_v17 }
 0x9cd   :  { %v979_v13 = vpop.f32.mrf.mxu0 }
 0x9ce   :  { %v980_v14 = vadd.f32 %v979_v13, %v906_v12 }
 0x9cf   :  { %v981_v16 = vpop.f32.mrf.mxu0 }
 0x9d0   :  { %v1463_v18 = vmul.f32 -1.442695, %v980_v14  ;;  %v982_v19 = vadd.f32 %v981_v16, %v907_v15 }
 0x9d2   :  { %v1464_v20 = vmul.f32 -1.442695, %v982_v19  ;;  %1614 = vpow2.f32 %v1463_v18 }
 0x9d4   :  { %1616 = vpow2.f32 %v1464_v20 }
 0x9df   :  { %v1615_v21 = vpop.eup %1614 }
 0x9e0   :  { %v990_v24 = vadd.f32 1.0, %v1615_v21 }
 0x9e1   :  { %v1617_v22 = vpop.eup %1616 }
 0x9e2   :  { %v991_v23 = vadd.f32 1.0, %v1617_v22 }
 0x9e4   :  { %1618 = vrcp.f32 %v991_v23  ;;  %v1221_v23 = vld [vmem:[#allocation2 + $0x18] sm:$0xc0] }
 0x9e5   :  { %1620 = vrcp.f32 %v990_v24  ;;  %v1222_v24 = vld [vmem:[#allocation2 + $0x8] sm:$0xc0] }
 0x9f1   :  { %v1619_v25 = vpop.eup %1618 }
 0x9f2   :  { %v996_v26 = vmul.f32 2.0, %v1619_v25  ;;  %v1621_v44 = vpop.eup %1620 }
 0x9f3   :  { %v998_v46 = vmul.f32 %v1621_v44, %v903_v8 }
 0x9f4   :  { %v1465_v27 = vadd.f32 -1.0, %v996_v26 }
 0x9f6   :  { %v999_v45 = vmul.f32 %v1621_v44, %v1465_v27  ;;  %v1229_v44 = vrot.slane %v1222_v24, 6 }
 0x9f8   :  { %1001 = vrot.lane.b32.xlu0 %v999_v45, %s1749_s5 }
 0xa6a   :  { %v1002_v47 = vpop.permute.xlu0 %1001 }
 0xa6b   :  { %v1004_v48 = vadd.f32 %v1002_v47, %v998_v46 }
 0xa6d   :  { %1622 = vtanh.f32 %v1004_v48 }
 0xa7a   :  { %v1623_v49 = vpop.eup %1622 }
 0xa7b   :  { %v1006_v50 = vmul.f32 %v1623_v49, %v1619_v25  ;;  %v1228_v25 = vrot.slane %v1221_v23, 6 }
 0xa7d   :  { %1010 = vrot.lane.b32.xlu1 %v1006_v50, %s1749_s5 }
 0xaef   :  { %v1011_v51 = vpop.permute.xlu1 %1010 }
 0xaf0   :  { %1466 = vmatmul.mubr.msk.f32.vlgmr.msra.gmra.mxu1 %vm487_vm6, %v1011_v51 }
 0xaf1   :  { %1251 = vmatpush1.msra.mxu1 %v1864_v29  ;;  %1298 = vmatprep.mubr.f32.mxu1 %v1748_v17  ;;  %v1007_v29 = vld [vmem:[#allocation2 + $0x18] sm:$0xc] }
 0xaf2   :  { %1252 = vmatprep.subr.mxu1 %v1870_v30  ;;  %v1008_v30 = vld [vmem:[#allocation2 + $0x8] sm:$0xc] }
 0xaf3   :  { %1253 = vmatpush1.msra.mxu1 %v1876_v31  ;;  %v1014_v31 = vrot.slane %v1007_v29, 2 }
 0xaf4   :  { %1254 = vmatprep.subr.mxu1 %v1881_v32 }
 0xaf5   :  { %1255 = vmatpush1.msra.mxu1 %v1887_v33 }
 0xaf6   :  { %1256 = vmatprep.subr.mxu1 %v1894_v34  ;;  %v1015_v34 = vrot.slane %v1008_v30, 2 }
 0xaf7   :  { %1257 = vmatpush1.msra.mxu1 %v1900_v35 }
 0xaf8   :  { %1258 = vmatprep.subr.mxu1 %v1905_v36 }
 0xaf9   :  { %1259 = vmatpush1.msra.mxu1 %v1911_v37 }
 0xafa   :  { %1260 = vmatprep.subr.mxu1 %v1918_v38 }
 0xafb   :  { %1261 = vmatpush1.msra.mxu1 %v1924_v39 }
 0xafc   :  { %1262 = vmatprep.subr.mxu1 %v1929_v40 }
 0xafd   :  { %1263 = vmatpush1.msra.mxu1 %v1934_v41 }
 0xafe   :  { %1264 = vmatprep.subr.mxu1 %v1940_v42 }
 0xaff   :  { %1265 = vmatpush1.msra.mxu1 %v1946_v43 }
 0xbb0   :  { %v1086_v32 = vpop.f32.mrf.mxu1 }
 0xbb1   :  { %v1087_v33 = vadd.f32 %v1086_v32, %v1014_v31 }
 0xbb2   :  { %v1088_v35 = vpop.f32.mrf.mxu1 }
 0xbb3   :  { %v1467_v36 = vmul.f32 -1.442695, %v1087_v33  ;;  %v1089_v37 = vadd.f32 %v1088_v35, %v1015_v34  ;;  %v1335_v35 = vld [vmem:[#allocation8 + $0x38] sm:$0xff] }
 0xbb5   :  { %v1468_v38 = vmul.f32 -1.442695, %v1089_v37  ;;  %1624 = vpow2.f32 %v1467_v36  ;;  %v1334_v36 = vld [vmem:[#allocation8 + $0x30] sm:$0xff]  ;;  %v1333_v37 = vld [vmem:[#allocation8 + $0x28] sm:$0xff] }
 0xbb7   :  { %1626 = vpow2.f32 %v1468_v38  ;;  %v1332_v38 = vld [vmem:[#allocation8 + $0x20] sm:$0xff] }
 0xbc2   :  { %v1625_v39 = vpop.eup %1624 }
 0xbc3   :  { %v1097_v41 = vadd.f32 1.0, %v1625_v39  ;;  %v1331_v39 = vld [vmem:[#allocation8 + $0x18] sm:$0xff] }
 0xbc4   :  { %v1627_v40 = vpop.eup %1626 }
 0xbc5   :  { %v1098_v52 = vadd.f32 1.0, %v1627_v40  ;;  %v1330_v40 = vld [vmem:[#allocation8 + $0x10] sm:$0xff] }
 0xbc7   :  { %1628 = vrcp.f32 %v1098_v52  ;;  %v1329_v52 = vld [vmem:[#allocation8 + $0x8] sm:$0xff] }
 0xbc8   :  { %1630 = vrcp.f32 %v1097_v41  ;;  %v1328_v41 = vld [vmem:[#allocation8] sm:$0xff] }
 0xbd4   :  { %v1629_v42 = vpop.eup %1628 }
 0xbd5   :  { %v1103_v43 = vmul.f32 2.0, %v1629_v42  ;;  %v1631_v54 = vpop.eup %1630 }
 0xbd6   :  { %v1105_v56 = vmul.f32 %v1631_v54, %v1004_v48 }
 0xbd7   :  { %v1469_v53 = vadd.f32 -1.0, %v1103_v43 }
 0xbd9   :  { %v1106_v55 = vmul.f32 %v1631_v54, %v1469_v53 }
 0xbdb   :  { %1108 = vrot.lane.b32.xlu0 %v1106_v55, %s1749_s5 }
 0xc4d   :  { %v1109_v57 = vpop.permute.xlu0 %1108 }
 0xc4e   :  { %v1111_v58 = vadd.f32 %v1109_v57, %v1105_v56  ;;  %v1478_v57 = vld [vmem:[%s2129_s8] ss:$0 sm:$0xff] }
 0xc50   :  { %1632 = vtanh.f32 %v1111_v58 }
 0xc5d   :  { %v1633_v59 = vpop.eup %1632 }
 0xc5e   :  { %v1113_v60 = vmul.f32 %v1633_v59, %v1629_v42 }
 0xc60   :  { %1117 = vrot.lane.b32.xlu1 %v1113_v60, %s1749_s5 }
 0xcd2   :  { %v1118_v61 = vpop.permute.xlu1 %1117 }
 0xcd3   :  { %1470 = vmatmul.mubr.msk.f32.vlgmr.msra.gmra.mxu0 %vm487_vm6, %v1118_v61 }
 0xcd4   :  { %1542 = vmatpush3.msra.mxu0 %v1335_v35  ;;  %1557 = vmatprep.mubr.msk.f32.mxu0 %vm1750_vm7, %v1748_v17 }
 0xcd5   :  { %1543 = vmatprep.subr.mxu0 %v1748_v17 }
 0xcd6   :  { %1544 = vmatpush3.msra.mxu0 %v1334_v36 }
 0xcd7   :  { %1545 = vmatprep.subr.mxu0 %v1748_v17 }
 0xcd8   :  { %1546 = vmatpush3.msra.mxu0 %v1333_v37 }
 0xcd9   :  { %1547 = vmatprep.subr.mxu0 %v1748_v17 }
 0xcda   :  { %1548 = vmatpush3.msra.mxu0 %v1332_v38 }
 0xcdb   :  { %1549 = vmatprep.subr.mxu0 %v1748_v17 }
 0xcdc   :  { %1550 = vmatpush3.msra.mxu0 %v1331_v39 }
 0xcdd   :  { %1551 = vmatprep.subr.mxu0 %v1748_v17 }
 0xcde   :  { %1552 = vmatpush3.msra.mxu0 %v1330_v40 }
 0xcdf   :  { %1553 = vmatprep.subr.mxu0 %v1748_v17 }
 0xce0   :  { %1554 = vmatpush3.msra.mxu0 %v1329_v52 }
 0xce1   :  { %1555 = vmatprep.subr.mxu0 %v1748_v17 }
 0xce2   :  { %1556 = vmatpush3.msra.mxu0 %v1328_v41 }
 0xd93   :  { %v1193_v1 = vpop.f32.mrf.mxu0 }
 0xd94   :  { %v1194_v2 = vadd.f32 %v1193_v1, %v1121_v0 }
 0xd95   :  { %v1195_v3 = vpop.f32.mrf.mxu0 }
 0xd96   :  { %v1471_v4 = vmul.f32 -1.442695, %v1194_v2  ;;  %v1196_v5 = vadd.f32 %v1195_v3, %v1122_v28 }
 0xd98   :  { %v1472_v6 = vmul.f32 -1.442695, %v1196_v5  ;;  %1634 = vpow2.f32 %v1471_v4 }
 0xd9a   :  { %1636 = vpow2.f32 %v1472_v6 }
 0xda5   :  { %v1635_v7 = vpop.eup %1634 }
 0xda6   :  { %v1204_v10 = vadd.f32 1.0, %v1635_v7 }
 0xda7   :  { %v1637_v8 = vpop.eup %1636 }
 0xda8   :  { %v1205_v9 = vadd.f32 1.0, %v1637_v8 }
 0xdaa   :  { %1638 = vrcp.f32 %v1205_v9 }
 0xdab   :  { %1640 = vrcp.f32 %v1204_v10 }
 0xdb7   :  { %v1639_v11 = vpop.eup %1638 }
 0xdb8   :  { %v1210_v12 = vmul.f32 2.0, %v1639_v11  ;;  %v1641_v14 = vpop.eup %1640 }
 0xdb9   :  { %v1212_v16 = vmul.f32 %v1641_v14, %v1111_v58 }
 0xdba   :  { %v1473_v13 = vadd.f32 -1.0, %v1210_v12 }
 0xdbc   :  { %v1213_v15 = vmul.f32 %v1641_v14, %v1473_v13 }
 0xdbe   :  { %1215 = vrot.lane.b32.xlu0 %v1213_v15, %s1749_s5 }
 0xe30   :  { %v1216_v18 = vpop.permute.xlu0 %1215 }
 0xe31   :  { %v1218_v19 = vadd.f32 %v1216_v18, %v1212_v16 }
 0xe33   :  { %1642 = vtanh.f32 %v1218_v19 }
 0xe40   :  { %v1643_v20 = vpop.eup %1642 }
 0xe41   :  { %v1220_v21 = vmul.f32 %v1643_v20, %v1639_v11 }
 0xe43   :  { %1224 = vrot.lane.b32.xlu1 %v1220_v21, %s1749_s5 }
 0xeb5   :  { %v1225_v22 = vpop.permute.xlu1 %1224 }
 0xeb6   :  { %1474 = vmatmul.mubr.msk.f32.vlgmr.msra.gmra.mxu1 %vm487_vm6, %v1225_v22 }
 0xf76   :  { %v1300_v26 = vpop.f32.mrf.mxu1 }
 0xf77   :  { %v1301_v27 = vadd.f32 %v1300_v26, %v1228_v25 }
 0xf78   :  { %v1302_v45 = vpop.f32.mrf.mxu1 }
 0xf79   :  { %v1475_v46 = vmul.f32 -1.442695, %v1301_v27  ;;  %v1303_v47 = vadd.f32 %v1302_v45, %v1229_v44 }
 0xf7b   :  { %v1476_v48 = vmul.f32 -1.442695, %v1303_v47  ;;  %1644 = vpow2.f32 %v1475_v46 }
 0xf7d   :  { %1646 = vpow2.f32 %v1476_v48 }
 0xf88   :  { %v1645_v49 = vpop.eup %1644 }
 0xf89   :  { %v1311_v29 = vadd.f32 1.0, %v1645_v49 }
 0xf8a   :  { %v1647_v50 = vpop.eup %1646 }
 0xf8b   :  { %v1312_v51 = vadd.f32 1.0, %v1647_v50 }
 0xf8d   :  { %1648 = vrcp.f32 %v1312_v51 }
 0xf8e   :  { %1650 = vrcp.f32 %v1311_v29 }
 0xf9a   :  { %v1649_v30 = vpop.eup %1648 }
 0xf9b   :  { %v1317_v31 = vmul.f32 2.0, %v1649_v30  ;;  %v1651_v33 = vpop.eup %1650 }
 0xf9c   :  { %v1319_v42 = vmul.f32 %v1651_v33, %v1218_v19 }
 0xf9d   :  { %v1477_v32 = vadd.f32 -1.0, %v1317_v31 }
 0xf9f   :  { %v1320_v34 = vmul.f32 %v1651_v33, %v1477_v32 }
 0xfa1   :  { %1322 = vrot.lane.b32.xlu0 %v1320_v34, %s1749_s5 }
0x1013   :  { %v1323_v43 = vpop.permute.xlu0 %1322 }
0x1014   :  { %v1325_v53 = vadd.f32 %v1323_v43, %v1319_v42 }
0x1016   :  { %1652 = vtanh.f32 %v1325_v53 }
0x1023   :  { %v1653_v54 = vpop.eup %1652 }
0x1024   :  { %v1327_v55 = vmul.f32 %v1653_v54, %v1649_v30 }
0x1026   :  { %1344 = vrot.lane.b32.xlu1 %v1327_v55, %s1749_s5 }
0x1098   :  { %v1345_v56 = vpop.permute.xlu1 %1344 }
0x1099   :  { %1558 = vmatmul.mubr.msk.f32.vlgmr.msra.gmra.mxu0 %vm487_vm6, %v1345_v56 }
0x1159   :  { %v1414_v58 = vpop.f32.mrf.mxu0 }
0x115a   :  { %v1415_v17 = vadd.f32 %v1478_v57, %v1414_v58 }
0x115b   :  { %v1559_v59 = vpop.f32.mrf.mxu0 }
0x115c   :  { %1418 = vst [vmem:[#allocation9] sm:$0x3] %v1415_v17 }
0x115d   :  { %1725 = shalt.err (!%p1722_p5)
}
0x115e   :  { %1428 = dma.vmem_to_hbm [thread:$0]  %s1426_s30, 32, %s2130_s9, [#allocation5]  }
0x115f   :  { %1738 = dma.done.wait [#allocation5], 32  }
0x1160   :  { %1739 = vsyncadd [#allocation5], 4294967264 }
0x1161   :  { %1432 = vsyncpa [#allocation4], 1 }
0x1162   :  { %1433 = vsyncpa [#allocation7], 1 }
0x1163   :  { %1434 = vsyncpa [#allocation5], 1 }

</bundles_post_ra>
